<compile_context>
chip_gen: v5e
topology: v5e:2x2
jax: 0.10.0
libtpu: 0.0.40
codegen_flags: <defaults>
</compile_context>

<pallas_src>
import jax
import jax.numpy as jnp
from jax import lax
from jax.experimental import pallas as pl
from jax.experimental.pallas import tpu as pltpu


def _mlp_kernel(xl_ref, xr_ref,
                w1l_ref, w1r_ref, b1_ref,
                w2_ref, b2_ref,
                w3_ref, b3_ref,
                o_ref):
    # Batch-major activation tiles, feature-major weights/compute:
    #   xl/xr  : (TM, 2*n_track)   batch on sublanes, features on lanes
    #   w1l/w1r: (64, 2*n_track)   w2: (64, 64)   w3: (6, 64)   (compute dtype)
    #   biases : (out, 1) f32
    #   o      : (6, TM)           lane-dense output tile
    cdt = w1l_ref.dtype
    xl = xl_ref[...].astype(cdt)
    xr = xr_ref[...].astype(cdt)
    # Contract the feature axis of both operands -> result is (out, TM):
    # batch lands on the 128-lane axis, so all stores stay lane-dense.
    dn = (((1,), (1,)), ((), ()))
    h1 = (lax.dot_general(w1l_ref[...], xl, dn, preferred_element_type=jnp.float32)
          + lax.dot_general(w1r_ref[...], xr, dn, preferred_element_type=jnp.float32)
          + b1_ref[...])
    h1 = jnp.maximum(h1, 0.0).astype(cdt)                                 # (64, TM)
    h2 = jnp.dot(w2_ref[...], h1, preferred_element_type=jnp.float32) + b2_ref[...]
    h2 = jnp.maximum(h2, 0.0).astype(cdt)                                 # (64, TM)
    y = jnp.dot(w3_ref[...], h2, preferred_element_type=jnp.float32) + b3_ref[...]
    o_ref[...] = y.astype(o_ref.dtype)                                    # (6, TM)


def init_params(key, n_track=10, n_waypoints=3, hidden_dim=64):
    """Torch-convention parameters: W has shape (out, in), b has shape (out,).

    Layer-1 input features are in torch's cat(dim=2) order:
        feature 4*i + c   = left  point i, coord c   (c in {0,1})
        feature 4*i + 2+c = right point i, coord c
    """
    input_dim = 2 * n_track * 2     # 40
    output_dim = 2 * n_waypoints    # 6
    ks = jax.random.split(key, 6)

    def linear(kw, kb, fan_in, fan_out):
        bound = 1.0 / jnp.sqrt(fan_in)
        w = jax.random.uniform(kw, (fan_out, fan_in), jnp.float32, -bound, bound)
        bvec = jax.random.uniform(kb, (fan_out,), jnp.float32, -bound, bound)
        return w, bvec

    w1, b1 = linear(ks[0], ks[1], input_dim, hidden_dim)
    w2, b2 = linear(ks[2], ks[3], hidden_dim, hidden_dim)
    w3, b3 = linear(ks[4], ks[5], hidden_dim, output_dim)
    return (w1, b1, w2, b2, w3, b3)


def prepare_kernel_params(params, n_track=10, compute_dtype=jnp.bfloat16):
    """One-time re-layout (call once, not per forward).

    Splits W1's columns into left/right halves (folds the torch cat(dim=2)
    permutation into the weights), casts weights to the compute dtype, and
    reshapes biases to (out, 1) f32 for the feature-major layout.
    """
    w1, b1, w2, b2, w3, b3 = params
    hidden = w1.shape[0]
    w1i = w1.reshape(hidden, n_track, 4)
    w1l = w1i[:, :, :2].reshape(hidden, 2 * n_track).astype(compute_dtype)   # (64, 20)
    w1r = w1i[:, :, 2:].reshape(hidden, 2 * n_track).astype(compute_dtype)   # (64, 20)
    return (w1l, w1r, b1.reshape(-1, 1).astype(jnp.float32),
            w2.astype(compute_dtype), b2.reshape(-1, 1).astype(jnp.float32),
            w3.astype(compute_dtype), b3.reshape(-1, 1).astype(jnp.float32))


def mlp_planner_forward(track_left, track_right, kernel_params,
                        *, n_waypoints=3, tm_max=2048):
    """track_left, track_right: (B, n_track, 2) -> waypoints (B, n_waypoints, 2)."""
    w1l, w1r, b1, w2, b2, w3, b3 = kernel_params
    b = track_left.shape[0]
    in_half = w1l.shape[1]          # 2 * n_track
    out_dim = w3.shape[0]           # 2 * n_waypoints

    # Free (metadata-only) reshapes: (B, n_track, 2) -> (B, 2*n_track).
    xl = track_left.reshape(b, in_half)
    xr = track_right.reshape(b, in_half)

    # Batch tile: multiple of 128, as large as useful, capped for VMEM /
    # megacore friendliness (2048 is safe on v5e/v6e/v7x; sweep tm_max if needed).
    tm_max = max(128, 128 * (tm_max // 128))
    tm = min(tm_max, 128 * pl.cdiv(b, 128))
    n_tiles = pl.cdiv(b, tm)        # last (partial) input tile is masked by Pallas
    bp = n_tiles * tm               # tile-padded output width (lane-dense stores)

    act_bytes = jnp.dtype(track_left.dtype).itemsize
    weight_bytes = int(sum(int(p.size) * jnp.dtype(p.dtype).itemsize
                           for p in kernel_params))
    cost = pl.CostEstimate(
        flops=2 * b * (2 * in_half * w1l.shape[0]
                       + w2.shape[0] * w2.shape[1]
                       + w3.shape[0] * w3.shape[1]),
        transcendentals=0,
        bytes_accessed=b * 2 * in_half * act_bytes + b * out_dim * 4 + weight_bytes,
    )

    # Rough per-step VMEM (double-buffered, lane-padded input tiles + intermediates).
    est_step_vmem = (2 * 2 * tm * 128 * act_bytes   # xl/xr tiles
                     + 2 * tm * 64 * 4              # h1/h2
                     + 2 * tm * 8 * 4               # output tile (sublane-padded)
                     + (1 << 20))                   # weights + slack
    cp_kwargs = dict(dimension_semantics=("parallel",))
    if est_step_vmem > 12 * (1 << 20):
        cp_kwargs["vmem_limit_bytes"] = int(min(2 * est_step_vmem, 100 * (1 << 20)))

    def resident(p):
        n = p.ndim
        return pl.BlockSpec(tuple(p.shape), lambda i, _n=n: (0,) * _n)

    y_t = pl.pallas_call(
        _mlp_kernel,
        out_shape=jax.ShapeDtypeStruct((out_dim, bp), jnp.float32),
        grid=(n_tiles,),
        in_specs=[
            pl.BlockSpec((tm, in_half), lambda i: (i, 0)),   # xl tile (batch-major)
            pl.BlockSpec((tm, in_half), lambda i: (i, 0)),   # xr tile (batch-major)
            resident(w1l), resident(w1r), resident(b1),
            resident(w2), resident(b2),
            resident(w3), resident(b3),
        ],
        out_specs=pl.BlockSpec((out_dim, tm), lambda i: (0, i)),
        compiler_params=pltpu.CompilerParams(**cp_kwargs),
        cost_estimate=cost,
    )(xl, xr, w1l, w1r, b1, w2, b2, w3, b3)

    # (6, bp) -> (B, n_waypoints, 2); tiny (6*B elements) copy.
    # TODO(synk): if the consumer can take feature-major (6, B), skip this.
    return y_t[:, :b].T.reshape(b, n_waypoints, 2)


if __name__ == "__main__":
    key = jax.random.PRNGKey(0)
    k_params, k_left, k_right = jax.random.split(key, 3)

    n_track, n_waypoints, batch = 10, 3, 4
    torch_params = init_params(k_params, n_track=n_track, n_waypoints=n_waypoints)
    kernel_params = prepare_kernel_params(torch_params, n_track=n_track,
                                          compute_dtype=jnp.bfloat16)

    track_left = jax.random.normal(k_left, (batch, n_track, 2), jnp.float32)
    track_right = jax.random.normal(k_right, (batch, n_track, 2), jnp.float32)

    waypoints = mlp_planner_forward(track_left, track_right, kernel_params,
                                    n_waypoints=n_waypoints)
    waypoints = jax.block_until_ready(waypoints)

    # Reference: exact torch semantics in plain JAX f32 (cat(dim=2).view then MLP).
    w1, b1, w2, b2, w3, b3 = torch_params
    x = jnp.concatenate([track_left, track_right], axis=2).reshape(batch, -1)
    ref = jnp.maximum(x @ w1.T + b1, 0.0)
    ref = jnp.maximum(ref @ w2.T + b2, 0.0)
    ref = (ref @ w3.T + b3).reshape(batch, n_waypoints, 2)

    assert waypoints.shape == (batch, n_waypoints, 2)
    # bf16 weights/activations with f32 accumulation -> loosened tolerance.
    assert jnp.allclose(waypoints, ref, atol=2e-2, rtol=2e-2), \
        float(jnp.max(jnp.abs(waypoints - ref)))

    print("KERNEL_OK")
</pallas_src>

<mosaic_0001>
module attributes {stable_mosaic.version = 11 : i64} {
  func.func @_mlp_kernel(%arg0: i32, %arg1: memref<128x20xf32, #tpu.memory_space<vmem>>, %arg2: memref<128x20xf32, #tpu.memory_space<vmem>>, %arg3: memref<64x20xbf16, #tpu.memory_space<vmem>>, %arg4: memref<64x20xbf16, #tpu.memory_space<vmem>>, %arg5: memref<64x1xf32, #tpu.memory_space<vmem>>, %arg6: memref<64x64xbf16, #tpu.memory_space<vmem>>, %arg7: memref<64x1xf32, #tpu.memory_space<vmem>>, %arg8: memref<6x64xbf16, #tpu.memory_space<vmem>>, %arg9: memref<6x1xf32, #tpu.memory_space<vmem>>, %arg10: memref<6x128xf32, #tpu.memory_space<vmem>>) attributes {dimension_semantics = [#tpu.dimension_semantics<parallel>], iteration_bounds = array<i64: 1>, scalar_prefetch = 0 : i64, scratch_operands = 0 : i64, tpu.core_type = #tpu.core_type<tc>, window_params = [{transform_indices = @transform_0, window_bounds = array<i64: 128, 20>}, {transform_indices = @transform_1, window_bounds = array<i64: 128, 20>}, {pipeline_mode = #tpu.pipeline_mode<synchronous>, transform_indices = @transform_2, window_bounds = array<i64: 64, 20>}, {pipeline_mode = #tpu.pipeline_mode<synchronous>, transform_indices = @transform_3, window_bounds = array<i64: 64, 20>}, {pipeline_mode = #tpu.pipeline_mode<synchronous>, transform_indices = @transform_4, window_bounds = array<i64: 64, 1>}, {pipeline_mode = #tpu.pipeline_mode<synchronous>, transform_indices = @transform_5, window_bounds = array<i64: 64, 64>}, {pipeline_mode = #tpu.pipeline_mode<synchronous>, transform_indices = @transform_6, window_bounds = array<i64: 64, 1>}, {pipeline_mode = #tpu.pipeline_mode<synchronous>, transform_indices = @transform_7, window_bounds = array<i64: 6, 64>}, {pipeline_mode = #tpu.pipeline_mode<synchronous>, transform_indices = @transform_8, window_bounds = array<i64: 6, 1>}, {transform_indices = @transform_9, window_bounds = array<i64: 6, 128>}]} {
    %c0 = arith.constant 0 : index
    %c0_0 = arith.constant 0 : index
    %0 = vector.load %arg1[%c0, %c0_0] : memref<128x20xf32, #tpu.memory_space<vmem>>, vector<128x20xf32>
    %1 = arith.truncf %0 : vector<128x20xf32> to vector<128x20xbf16>
    %c0_1 = arith.constant 0 : index
    %c0_2 = arith.constant 0 : index
    %2 = vector.load %arg2[%c0_1, %c0_2] : memref<128x20xf32, #tpu.memory_space<vmem>>, vector<128x20xf32>
    %3 = arith.truncf %2 : vector<128x20xf32> to vector<128x20xbf16>
    %c0_3 = arith.constant 0 : index
    %c0_4 = arith.constant 0 : index
    %4 = vector.load %arg3[%c0_3, %c0_4] : memref<64x20xbf16, #tpu.memory_space<vmem>>, vector<64x20xbf16>
    %cst = arith.constant dense<0.000000e+00> : vector<64x128xf32>
    %5 = tpu.matmul %4, %1, %cst {dimension_numbers = #tpu.dot_dimension_numbers<[1], [1], [0], [0], [0, 0, 1, 0], [], []>} : vector<64x20xbf16>, vector<128x20xbf16>, vector<64x128xf32> -> vector<64x128xf32>
    %c0_5 = arith.constant 0 : index
    %c0_6 = arith.constant 0 : index
    %6 = vector.load %arg4[%c0_5, %c0_6] : memref<64x20xbf16, #tpu.memory_space<vmem>>, vector<64x20xbf16>
    %cst_7 = arith.constant dense<0.000000e+00> : vector<64x128xf32>
    %7 = tpu.matmul %6, %3, %cst_7 {dimension_numbers = #tpu.dot_dimension_numbers<[1], [1], [0], [0], [0, 0, 1, 0], [], []>} : vector<64x20xbf16>, vector<128x20xbf16>, vector<64x128xf32> -> vector<64x128xf32>
    %8 = arith.addf %5, %7 : vector<64x128xf32>
    %c0_8 = arith.constant 0 : index
    %c0_9 = arith.constant 0 : index
    %9 = vector.load %arg5[%c0_8, %c0_9] : memref<64x1xf32, #tpu.memory_space<vmem>>, vector<64x1xf32>
    %10 = vector.broadcast %9 : vector<64x1xf32> to vector<64x128xf32>
    %11 = arith.addf %8, %10 : vector<64x128xf32>
    %cst_10 = arith.constant 0.000000e+00 : f32
    %12 = vector.broadcast %cst_10 : f32 to vector<64x128xf32>
    %13 = arith.maximumf %11, %12 : vector<64x128xf32>
    %14 = arith.truncf %13 : vector<64x128xf32> to vector<64x128xbf16>
    %c0_11 = arith.constant 0 : index
    %c0_12 = arith.constant 0 : index
    %15 = vector.load %arg6[%c0_11, %c0_12] : memref<64x64xbf16, #tpu.memory_space<vmem>>, vector<64x64xbf16>
    %cst_13 = arith.constant dense<0.000000e+00> : vector<64x128xf32>
    %16 = tpu.matmul %15, %14, %cst_13 {dimension_numbers = #tpu.dot_dimension_numbers<[1], [0], [0], [1], [0, 0, 1, 1], [], []>} : vector<64x64xbf16>, vector<64x128xbf16>, vector<64x128xf32> -> vector<64x128xf32>
    %c0_14 = arith.constant 0 : index
    %c0_15 = arith.constant 0 : index
    %17 = vector.load %arg7[%c0_14, %c0_15] : memref<64x1xf32, #tpu.memory_space<vmem>>, vector<64x1xf32>
    %18 = vector.broadcast %17 : vector<64x1xf32> to vector<64x128xf32>
    %19 = arith.addf %16, %18 : vector<64x128xf32>
    %cst_16 = arith.constant 0.000000e+00 : f32
    %20 = vector.broadcast %cst_16 : f32 to vector<64x128xf32>
    %21 = arith.maximumf %19, %20 : vector<64x128xf32>
    %22 = arith.truncf %21 : vector<64x128xf32> to vector<64x128xbf16>
    %c0_17 = arith.constant 0 : index
    %c0_18 = arith.constant 0 : index
    %23 = vector.load %arg8[%c0_17, %c0_18] : memref<6x64xbf16, #tpu.memory_space<vmem>>, vector<6x64xbf16>
    %cst_19 = arith.constant dense<0.000000e+00> : vector<6x128xf32>
    %24 = tpu.matmul %23, %22, %cst_19 {dimension_numbers = #tpu.dot_dimension_numbers<[1], [0], [0], [1], [0, 0, 1, 1], [], []>} : vector<6x64xbf16>, vector<64x128xbf16>, vector<6x128xf32> -> vector<6x128xf32>
    %c0_20 = arith.constant 0 : index
    %c0_21 = arith.constant 0 : index
    %25 = vector.load %arg9[%c0_20, %c0_21] : memref<6x1xf32, #tpu.memory_space<vmem>>, vector<6x1xf32>
    %26 = vector.broadcast %25 : vector<6x1xf32> to vector<6x128xf32>
    %27 = arith.addf %24, %26 : vector<6x128xf32>
    %c0_22 = arith.constant 0 : index
    %c0_23 = arith.constant 0 : index
    %28 = vector.load %arg10[%c0_22, %c0_23] : memref<6x128xf32, #tpu.memory_space<vmem>>, vector<6x128xf32>
    tpu.vector_store %arg10[%c0_22, %c0_23], %27 {strides = array<i32>} : memref<6x128xf32, #tpu.memory_space<vmem>>, vector<6x128xf32>,
    return
  }
  func.func @transform_0(%arg0: i32) -> (i32, i32) {
    %c0_i32 = arith.constant 0 : i32
    %c0_i32_0 = arith.constant 0 : i32
    return %arg0, %c0_i32 : i32, i32
  }
  func.func @transform_1(%arg0: i32) -> (i32, i32) {
    %c0_i32 = arith.constant 0 : i32
    %c0_i32_0 = arith.constant 0 : i32
    return %arg0, %c0_i32 : i32, i32
  }
  func.func @transform_2(%arg0: i32) -> (i32, i32) {
    %c0_i32 = arith.constant 0 : i32
    %c0_i32_0 = arith.constant 0 : i32
    %c0_i32_1 = arith.constant 0 : i32
    return %c0_i32, %c0_i32_0 : i32, i32
  }
  func.func @transform_3(%arg0: i32) -> (i32, i32) {
    %c0_i32 = arith.constant 0 : i32
    %c0_i32_0 = arith.constant 0 : i32
    %c0_i32_1 = arith.constant 0 : i32
    return %c0_i32, %c0_i32_0 : i32, i32
  }
  func.func @transform_4(%arg0: i32) -> (i32, i32) {
    %c0_i32 = arith.constant 0 : i32
    %c0_i32_0 = arith.constant 0 : i32
    %c0_i32_1 = arith.constant 0 : i32
    return %c0_i32, %c0_i32_0 : i32, i32
  }
  func.func @transform_5(%arg0: i32) -> (i32, i32) {
    %c0_i32 = arith.constant 0 : i32
    %c0_i32_0 = arith.constant 0 : i32
    %c0_i32_1 = arith.constant 0 : i32
    return %c0_i32, %c0_i32_0 : i32, i32
  }
  func.func @transform_6(%arg0: i32) -> (i32, i32) {
    %c0_i32 = arith.constant 0 : i32
    %c0_i32_0 = arith.constant 0 : i32
    %c0_i32_1 = arith.constant 0 : i32
    return %c0_i32, %c0_i32_0 : i32, i32
  }
  func.func @transform_7(%arg0: i32) -> (i32, i32) {
    %c0_i32 = arith.constant 0 : i32
    %c0_i32_0 = arith.constant 0 : i32
    %c0_i32_1 = arith.constant 0 : i32
    return %c0_i32, %c0_i32_0 : i32, i32
  }
  func.func @transform_8(%arg0: i32) -> (i32, i32) {
    %c0_i32 = arith.constant 0 : i32
    %c0_i32_0 = arith.constant 0 : i32
    %c0_i32_1 = arith.constant 0 : i32
    return %c0_i32, %c0_i32_0 : i32, i32
  }
  func.func @transform_9(%arg0: i32) -> (i32, i32) {
    %c0_i32 = arith.constant 0 : i32
    %c0_i32_0 = arith.constant 0 : i32
    return %c0_i32, %arg0 : i32, i32
  }
}

</mosaic_0001>

<bundles_post_ra>
// kernel: tpu_custom_call.1
= control target key start
LH: loop header
LB: loop body
LE: loop exit
PB: predicated region body
PF: predicated region fallthrough
CT: control target
= control target key end

     0   :  { %vm118_vm0 = vcmask 162816   ;;  %s889_s0 = inlined_call_operand.vmem [shape: f32[4,20], index: 0, kind: input, shape index: {}]   ;;  %s890_s1 = inlined_call_operand.vmem [shape: f32[4,20], index: 1, kind: input, shape index: {}]   ;;  %s891_s2 = inlined_call_operand.vmem [shape: bf16[64,20], index: 2, kind: input, shape index: {}]   ;;  %s892_s3 = inlined_call_operand.vmem [shape: bf16[64,20], index: 3, kind: input, shape index: {}]   ;;  %s893_s4 = inlined_call_operand.vmem [shape: f32[64,1], index: 4, kind: input, shape index: {}]   ;;  %s894_s5 = inlined_call_operand.vmem [shape: bf16[64,64], index: 5, kind: input, shape index: {}]   ;;  %s895_s6 = inlined_call_operand.vmem [shape: f32[64,1], index: 6, kind: input, shape index: {}]   ;;  %s896_s7 = inlined_call_operand.vmem [shape: bf16[6,64], index: 7, kind: input, shape index: {}]   ;;  %s897_s8 = inlined_call_operand.vmem [shape: f32[6,1], index: 8, kind: input, shape index: {}]   ;;  %s898_s9 = inlined_call_operand.hbm [shape: f32[6,128], index: 9, kind: output, shape index: {}]  }
   0x1   :  { %v72_v0 = vld [vmem:[%s890_s1 + $0x70] sm:$0xff]  ;;  %v73_v1 = vld [vmem:[%s890_s1 + $0x78] sm:$0xff]  ;;  %v70_v6 = vld [vmem:[%s890_s1 + $0x60] sm:$0xff] }
   0x2   :  { %v48_v2 = vld [vmem:[%s889_s0 + $0x70] sm:$0xff]  ;;  %v81_v3 = vpack.c.bf16 %v73_v1, %v72_v0  ;;  %v49_v4 = vld [vmem:[%s889_s0 + $0x78] sm:$0xff]  ;;  %v71_v7 = vld [vmem:[%s890_s1 + $0x68] sm:$0xff] }
   0x3   :  { %v57_v5 = vpack.c.bf16 %v49_v4, %v48_v2  ;;  %v46_v9 = vld [vmem:[%s889_s0 + $0x60] sm:$0xff]  ;;  %v47_v10 = vld [vmem:[%s889_s0 + $0x68] sm:$0xff]  ;;  %v80_v12 = vpack.c.bf16 %v71_v7, %v70_v6 }
   0x4   :  { %v153_v8 = vsel %vm118_vm0, %v81_v3, 0  ;;  %v56_v13 = vpack.c.bf16 %v47_v10, %v46_v9 }
   0x5   :  { %155 = vmatpush.bf16.xpose.msra.mxu0 %v153_v8  ;;  %v238_v11 = vsel %vm118_vm0, %v57_v5, 0  ;;  %580 = vmatpush.bf16.xpose.msra.mxu3 %v153_v8 }
   0x6   :  { %240 = vmatpush.bf16.xpose.msra.mxu1 %v238_v11 }
   0x7   :  { %14 = vsyncpa [#allocation3], 0  ;;  %v150_v14 = vsel %vm118_vm0, %v80_v12, 0  ;;  %v235_v15 = vsel %vm118_vm0, %v56_v13, 0  ;;  %v68_v16 = vld [vmem:[%s890_s1 + $0x50] sm:$0xff]  ;;  %v69_v17 = vld [vmem:[%s890_s1 + $0x58] sm:$0xff] }
   0x8   :  { %v44_v18 = vld [vmem:[%s889_s0 + $0x50] sm:$0xff]  ;;  %v45_v19 = vld [vmem:[%s889_s0 + $0x58] sm:$0xff]  ;;  %v79_v20 = vpack.c.bf16 %v69_v17, %v68_v16  ;;  %v66_v24 = vld [vmem:[%s890_s1 + $0x40] sm:$0xff]  ;;  %v619_v39 = vmov 0   ;;  %vm413_vm1 = vcmask 523264   ;;  %s620_s18 = smov [#allocation2]  }
   0x9   :  { %v55_v21 = vpack.c.bf16 %v45_v19, %v44_v18  ;;  %v67_v25 = vld [vmem:[%s890_s1 + $0x48] sm:$0xff]  ;;  %v42_v26 = vld [vmem:[%s889_s0 + $0x40] sm:$0xff]  ;;  %v64_v32 = vld [vmem:[%s890_s1 + $0x30] sm:$0xff]  ;;  %590 = vset.pattern.permute.xlu0 %v619_v39  ;;  %591 = vset.pattern.permute.xlu1 %v619_v39  ;;  %s496_s19 = sshll.u32 %s620_s18, 4  ;;  %s497_s19 = int_to_ptr.vmem [resolvable:$true] %s496_s19 }
   0xa   :  { %v147_v22 = vsel %vm118_vm0, %v79_v20, 0  ;;  %v43_v27 = vld [vmem:[%s889_s0 + $0x48] sm:$0xff]  ;;  %v78_v28 = vpack.c.bf16 %v67_v25, %v66_v24  ;;  %v65_v33 = vld [vmem:[%s890_s1 + $0x38] sm:$0xff]  ;;  %v40_v34 = vld [vmem:[%s889_s0 + $0x30] sm:$0xff]  ;;  %592 = vset.pattern.permute.xlu2 %v619_v39 }
   0xb   :  { %v232_v23 = vsel %vm118_vm0, %v55_v21, 0  ;;  %v54_v29 = vpack.c.bf16 %v43_v27, %v42_v26  ;;  %v41_v35 = vld [vmem:[%s889_s0 + $0x38] sm:$0xff]  ;;  %v77_v36 = vpack.c.bf16 %v65_v33, %v64_v32  ;;  %v275_v37 = vld [vmem:[%s893_s4 + $0x30] sm:$0xff]  ;;  %v62_v42 = vld [vmem:[%s890_s1 + $0x20] sm:$0xff] }
   0xc   :  { %v144_v30 = vsel %vm118_vm0, %v78_v28, 0  ;;  %v53_v38 = vpack.c.bf16 %v41_v35, %v40_v34  ;;  %309 = vperm.xlu0 %590, %v275_v37   ;;  %v63_v43 = vld [vmem:[%s890_s1 + $0x28] sm:$0xff]  ;;  %v38_v44 = vld [vmem:[%s889_s0 + $0x20] sm:$0xff]  ;;  %v276_v46 = vld [vmem:[%s893_s4 + $0x38] sm:$0xff] }
   0xd   :  { %156 = vmatpush.bf16.xpose.msra.mxu0 %v150_v14  ;;  %581 = vmatpush.bf16.xpose.msra.mxu3 %v150_v14  ;;  %v229_v31 = vsel %vm118_vm0, %v54_v29, 0  ;;  %v141_v40 = vsel %vm118_vm0, %v77_v36, 0  ;;  %v39_v45 = vld [vmem:[%s889_s0 + $0x28] sm:$0xff]  ;;  %v273_v47 = vld [vmem:[%s893_s4 + $0x20] sm:$0xff]  ;;  %v76_v48 = vpack.c.bf16 %v63_v43, %v62_v42  ;;  %v60_v52 = vld [vmem:[%s890_s1 + $0x10] sm:$0xff] }
   0xe   :  { %241 = vmatpush.bf16.xpose.msra.mxu1 %v235_v15  ;;  %v226_v41 = vsel %vm118_vm0, %v53_v38, 0  ;;  %299 = vperm.xlu1 %591, %v273_v47   ;;  %v52_v49 = vpack.c.bf16 %v39_v45, %v38_v44  ;;  %v61_v53 = vld [vmem:[%s890_s1 + $0x18] sm:$0xff]  ;;  %v274_v54 = vld [vmem:[%s893_s4 + $0x28] sm:$0xff]  ;;  %v36_v55 = vld [vmem:[%s889_s0 + $0x10] sm:$0xff] }
   0xf   :  { %v138_v50 = vsel %vm118_vm0, %v76_v48, 0  ;;  %v37_v56 = vld [vmem:[%s889_s0 + $0x18] sm:$0xff]  ;;  %v269_v57 = vld [vmem:[%s893_s4] sm:$0xff]  ;;  %v75_v58 = vpack.c.bf16 %v61_v53, %v60_v52  ;;  %v59_v63 = vld [vmem:[%s890_s1 + $0x8] sm:$0xff] }
  0x10   :  { %v223_v51 = vsel %vm118_vm0, %v52_v49, 0  ;;  %v51_v59 = vpack.c.bf16 %v37_v56, %v36_v55  ;;  %v58_v62 = vld [vmem:[%s890_s1] sm:$0xff]  ;;  %v35_v1 = vld [vmem:[%s889_s0 + $0x8] sm:$0xff]  ;;  %v575_v9 = vld [vmem:[%s892_s3 + $0x18] sm:$0xff]  ;;  %s498_s1 = sshll.u32 %s898_s9, 4  ;;  %s499_s1 = int_to_ptr.hbm [resolvable:$true] %s498_s1 }
  0x11   :  { %v135_v60 = vsel %vm118_vm0, %v75_v58, 0  ;;  %v34_v0 = vld [vmem:[%s889_s0] sm:$0xff]  ;;  %v270_v2 = vld [vmem:[%s893_s4 + $0x8] sm:$0xff]  ;;  %v74_v3 = vpack.c.bf16 %v59_v63, %v58_v62  ;;  %v352_v10 = vld [vmem:[%s895_s6 + $0x38] sm:$0xff] }
  0x12   :  { %v220_v61 = vsel %vm118_vm0, %v51_v59, 0  ;;  %v50_v4 = vpack.c.bf16 %v35_v1, %v34_v0  ;;  %v572_v7 = vld [vmem:[%s892_s3] sm:$0xff]  ;;  %v573_v11 = vld [vmem:[%s892_s3 + $0x8] sm:$0xff]  ;;  %v271_v14 = vld [vmem:[%s893_s4 + $0x10] sm:$0xff] }
  0x13   :  { %v132_v5 = vsel %vm118_vm0, %v74_v3, 0  ;;  %v568_v8 = vld [vmem:[%s891_s2] sm:$0xff]  ;;  %v569_v12 = vld [vmem:[%s891_s2 + $0x8] sm:$0xff]  ;;  %v347_v15 = vld [vmem:[%s895_s6 + $0x10] sm:$0xff]  ;;  %289 = vperm.xlu2 %592, %v271_v14  }
  0x14   :  { %314 = vperm.xlu0 %590, %v276_v46   ;;  %v217_v6 = vsel %vm118_vm0, %v50_v4, 0  ;;  %v349_v13 = vld [vmem:[%s895_s6 + $0x20] sm:$0xff]  ;;  %v348_v16 = vld [vmem:[%s895_s6 + $0x18] sm:$0xff]  ;;  %v346_v18 = vld [vmem:[%s895_s6 + $0x8] sm:$0xff] }
  0x15   :  { %157 = vmatpush.bf16.xpose.msra.mxu0 %v147_v22  ;;  %582 = vmatpush.bf16.xpose.msra.mxu3 %v147_v22  ;;  %v272_v17 = vld [vmem:[%s893_s4 + $0x18] sm:$0xff]  ;;  %v574_v19 = vld [vmem:[%s892_s3 + $0x10] sm:$0xff]  ;;  %v468_v21 = vld [vmem:[%s897_s8] sm:$0x3f] }
  0x16   :  { %242 = vmatpush.bf16.xpose.msra.mxu1 %v232_v23  ;;  %304 = vperm.xlu1 %591, %v274_v54   ;;  %v570_v20 = vld [vmem:[%s891_s2 + $0x10] sm:$0xff]  ;;  %v350_v23 = vld [vmem:[%s895_s6 + $0x28] sm:$0xff]  ;;  %v571_v24 = vld [vmem:[%s891_s2 + $0x18] sm:$0xff] }
  0x17   :  { %v351_v22 = vld [vmem:[%s895_s6 + $0x30] sm:$0xff]  ;;  %v345_v25 = vld [vmem:[%s895_s6] sm:$0xff] }
  0x18   :  { %v576_v14 = vld [vmem:[%s894_s5] sm:$0xff] }
  0x1b   :  { %294 = vperm.xlu2 %592, %v272_v17   ;;  %v579_v17 = vld [vmem:[%s894_s5 + $0x18] sm:$0xff] }
  0x1c   :  { %279 = vperm.xlu0 %590, %v269_v57  }
  0x1d   :  { %158 = vmatpush.bf16.xpose.msra.mxu0 %v144_v30  ;;  %583 = vmatpush.bf16.xpose.msra.mxu3 %v144_v30 }
  0x1e   :  { %243 = vmatpush.bf16.xpose.msra.mxu1 %v229_v31  ;;  %284 = vperm.xlu1 %591, %v270_v2  }
  0x23   :  { %385 = vperm.xlu2 %592, %v351_v22  }
  0x24   :  { %390 = vperm.xlu0 %590, %v352_v10  }
  0x25   :  { %159 = vmatpush.bf16.xpose.msra.mxu0 %v141_v40  ;;  %584 = vmatpush.bf16.xpose.msra.mxu3 %v141_v40 }
  0x26   :  { %244 = vmatpush.bf16.xpose.msra.mxu1 %v226_v41  ;;  %375 = vperm.xlu1 %591, %v349_v13  }
  0x2b   :  { %380 = vperm.xlu2 %592, %v350_v23  }
  0x2c   :  { %365 = vperm.xlu0 %590, %v347_v15   ;;  %v577_v15 = vld [vmem:[%s894_s5 + $0x8] sm:$0xff] }
  0x2d   :  { %160 = vmatpush.bf16.xpose.msra.mxu0 %v138_v50  ;;  %585 = vmatpush.bf16.xpose.msra.mxu3 %v138_v50 }
  0x2e   :  { %245 = vmatpush.bf16.xpose.msra.mxu1 %v223_v51  ;;  %370 = vperm.xlu1 %591, %v348_v16   ;;  %v578_v16 = vld [vmem:[%s894_s5 + $0x10] sm:$0xff] }
  0x33   :  { %355 = vperm.xlu2 %592, %v345_v25  }
  0x34   :  { %360 = vperm.xlu0 %590, %v346_v18  }
  0x35   :  { %161 = vmatpush.bf16.xpose.msra.mxu0 %v135_v60  ;;  %586 = vmatpush.bf16.xpose.msra.mxu3 %v135_v60 }
  0x36   :  { %246 = vmatpush.bf16.xpose.msra.mxu1 %v220_v61  ;;  %471 = vperm.xlu1 %591, %v468_v21  }
  0x3d   :  { %162 = vmatpush.bf16.xpose.msra.mxu0 %v132_v5  ;;  %587 = vmatpush.bf16.xpose.msra.mxu3 %v132_v5 }
  0x3e   :  { %247 = vmatpush.bf16.xpose.msra.mxu1 %v217_v6 }
  0x44   :  { %523 = vmatmul.msk.bf16.vlgmr.msra.gmra.mxu0 %vm118_vm0, %v572_v7  ;;  %526 = vmatmul.msk.bf16.vlgmr.msra.gmra.mxu3 %vm118_vm0, %v575_v9 }
  0x45   :  { %543 = vmatmul.msk.bf16.vlgmr.msra.gmra.mxu1 %vm118_vm0, %v568_v8 }
  0x54   :  { %524 = vmatmul.msk.bf16.gmra.mxu0 %vm118_vm0, %v573_v11 }
  0x55   :  { %544 = vmatmul.msk.bf16.gmra.mxu1 %vm118_vm0, %v569_v12 }
  0x64   :  { %525 = vmatmul.msk.bf16.gmra.mxu0 %vm118_vm0, %v574_v19 }
  0x65   :  { %545 = vmatmul.msk.bf16.gmra.mxu1 %vm118_vm0, %v570_v20 }
  0x6d   :  { %v290_v41 = vpop.permute.xlu2 %289 }
  0x75   :  { %546 = vmatmul.msk.bf16.gmra.mxu1 %vm118_vm0, %v571_v24  ;;  %v295_v55 = vpop.permute.xlu2 %294 }
  0x7d   :  { %v386_v25 = vpop.permute.xlu2 %385 }
  0x7e   :  { %v310_v38 = vpop.permute.xlu0 %309 }
  0x80   :  { %v300_v37 = vpop.permute.xlu1 %299 }
  0x86   :  { %v315_v45 = vpop.permute.xlu0 %314 }
  0x88   :  { %v305_v44 = vpop.permute.xlu1 %304 }
  0x8e   :  { %v280_v4 = vpop.permute.xlu0 %279 }
  0x90   :  { %v285_v0 = vpop.permute.xlu1 %284 }
  0x96   :  { %v391_v24 = vpop.permute.xlu0 %390 }
  0xc1   :  { %v164_v27 = vpop.f32.mrf.mxu0 }
  0xc2   :  { %v249_v26 = vpop.f32.mrf.mxu1 }
  0xc3   :  { %v250_v1 = vadd.f32 %v249_v26, %v164_v27  ;;  %v376_v27 = vpop.permute.xlu1 %375 }
  0xc5   :  { %v317_v8 = vadd.f32 %v280_v4, %v250_v1 }
  0xc7   :  { %v179_v39 = vpop.f32.mrf.mxu3  ;;  %v325_v12 = vmax.f32 %v317_v8, 0.0 }
  0xc9   :  { %v166_v29 = vpop.f32.mrf.mxu0 }
  0xca   :  { %v251_v28 = vpop.f32.mrf.mxu1 }
  0xcb   :  { %v252_v60 = vadd.f32 %v251_v28, %v166_v29  ;;  %v366_v28 = vpop.permute.xlu0 %365 }
  0xcd   :  { %v318_v5 = vadd.f32 %v285_v0, %v252_v60 }
  0xcf   :  { %v181_v47 = vpop.f32.mrf.mxu3  ;;  %v326_v10 = vmax.f32 %v318_v5, 0.0 }
  0xd1   :  { %v169_v31 = vpop.f32.mrf.mxu0  ;;  %v333_v13 = vpack.c.bf16 %v326_v10, %v325_v12 }
  0xd2   :  { %v254_v30 = vpop.f32.mrf.mxu1 }
  0xd3   :  { %v255_v56 = vadd.f32 %v254_v30, %v169_v31  ;;  %v381_v30 = vpop.permute.xlu2 %380 }
  0xd5   :  { %v319_v2 = vadd.f32 %v290_v41, %v255_v56 }
  0xd7   :  { %v327_v9 = vmax.f32 %v319_v2, 0.0 }
  0xd9   :  { %v171_v33 = vpop.f32.mrf.mxu0 }
  0xda   :  { %v256_v32 = vpop.f32.mrf.mxu1 }
  0xdb   :  { %v257_v52 = vadd.f32 %v256_v32, %v171_v33 }
  0xdd   :  { %v320_v61 = vadd.f32 %v295_v55, %v257_v52 }
  0xdf   :  { %v328_v6 = vmax.f32 %v320_v61, 0.0 }
  0xe1   :  { %v174_v36 = vpop.f32.mrf.mxu0  ;;  %v334_v11 = vpack.c.bf16 %v328_v6, %v327_v9 }
  0xe2   :  { %v259_v34 = vpop.f32.mrf.mxu1 }
  0xe3   :  { %v260_v49 = vadd.f32 %v259_v34, %v174_v36 }
  0xe5   :  { %v321_v57 = vadd.f32 %v300_v37, %v260_v49  ;;  %v371_v37 = vpop.permute.xlu1 %370 }
  0xe7   :  { %v329_v3 = vmax.f32 %v321_v57, 0.0 }
  0xe9   :  { %v176_v42 = vpop.f32.mrf.mxu0 }
  0xea   :  { %v261_v35 = vpop.f32.mrf.mxu1 }
  0xeb   :  { %v262_v46 = vadd.f32 %v261_v35, %v176_v42 }
  0xed   :  { %v322_v53 = vadd.f32 %v305_v44, %v262_v46  ;;  %v472_v55 = vpop.permute.xlu1 %471 }
  0xef   :  { %v330_v62 = vmax.f32 %v322_v53, 0.0 }
  0xf1   :  { %v335_v7 = vpack.c.bf16 %v330_v62, %v329_v3 }
  0xf2   :  { %v264_v40 = vpop.f32.mrf.mxu1 }
  0xf3   :  { %v265_v43 = vadd.f32 %v264_v40, %v179_v39 }
  0xf5   :  { %v323_v51 = vadd.f32 %v310_v38, %v265_v43  ;;  %v361_v43 = vpop.permute.xlu0 %360 }
  0xf7   :  { %v331_v58 = vmax.f32 %v323_v51, 0.0 }
  0xfa   :  { %v266_v48 = vpop.f32.mrf.mxu1 }
  0xfb   :  { %v267_v50 = vadd.f32 %v266_v48, %v181_v47  ;;  %v356_v47 = vpop.permute.xlu2 %355 }
  0xfd   :  { %v324_v54 = vadd.f32 %v315_v45, %v267_v50 }
  0xff   :  { %v332_v59 = vmax.f32 %v324_v54, 0.0  ;;  %v467_v54 = vld [vmem:[%s896_s7] sm:$0x7] }
 0x101   :  { %v336_v63 = vpack.c.bf16 %v332_v59, %v331_v58 }
 0x103   :  { %430 = vmatpush.bf16.msra.mxu2 %v336_v63 }
 0x107   :  { %431 = vmatpush.bf16.msra.mxu2 %v335_v7 }
 0x10b   :  { %432 = vmatpush.bf16.msra.mxu2 %v334_v11 }
 0x10f   :  { %433 = vmatpush.bf16.msra.mxu2 %v333_v13 }
 0x112   :  { %563 = vmatmul.msk.bf16.vlgmr.msra.gmra.mxu2 %vm413_vm1, %v576_v14 }
 0x122   :  { %564 = vmatmul.msk.bf16.gmra.mxu2 %vm413_vm1, %v577_v15 }
 0x132   :  { %565 = vmatmul.msk.bf16.gmra.mxu2 %vm413_vm1, %v578_v16 }
 0x142   :  { %566 = vmatmul.msk.bf16.gmra.mxu2 %vm413_vm1, %v579_v17 }
 0x195   :  { %v435_v18 = vpop.f32.mrf.mxu2 }
 0x196   :  { %v436_v48 = vadd.f32 %v435_v18, %v356_v47 }
 0x198   :  { %v455_v52 = vmax.f32 %v436_v48, 0.0 }
 0x19d   :  { %v437_v19 = vpop.f32.mrf.mxu2 }
 0x19e   :  { %v438_v44 = vadd.f32 %v437_v19, %v361_v43 }
 0x1a0   :  { %v456_v50 = vmax.f32 %v438_v44, 0.0 }
 0x1a2   :  { %v463_v53 = vpack.c.bf16 %v456_v50, %v455_v52 }
 0x1a5   :  { %v440_v20 = vpop.f32.mrf.mxu2 }
 0x1a6   :  { %v441_v41 = vadd.f32 %v440_v20, %v366_v28 }
 0x1a8   :  { %v457_v49 = vmax.f32 %v441_v41, 0.0 }
 0x1ad   :  { %v442_v21 = vpop.f32.mrf.mxu2 }
 0x1ae   :  { %v443_v38 = vadd.f32 %v442_v21, %v371_v37 }
 0x1b0   :  { %v458_v45 = vmax.f32 %v443_v38, 0.0 }
 0x1b2   :  { %v464_v51 = vpack.c.bf16 %v458_v45, %v457_v49 }
 0x1b5   :  { %v445_v22 = vpop.f32.mrf.mxu2 }
 0x1b6   :  { %v446_v34 = vadd.f32 %v445_v22, %v376_v27 }
 0x1b8   :  { %v459_v42 = vmax.f32 %v446_v34, 0.0 }
 0x1bd   :  { %v447_v23 = vpop.f32.mrf.mxu2 }
 0x1be   :  { %v448_v32 = vadd.f32 %v447_v23, %v381_v30 }
 0x1c0   :  { %v460_v39 = vmax.f32 %v448_v32, 0.0 }
 0x1c2   :  { %v465_v46 = vpack.c.bf16 %v460_v39, %v459_v42 }
 0x1c5   :  { %v450_v26 = vpop.f32.mrf.mxu2 }
 0x1c6   :  { %v451_v29 = vadd.f32 %v450_v26, %v386_v25 }
 0x1c8   :  { %v461_v35 = vmax.f32 %v451_v29, 0.0 }
 0x1cd   :  { %v452_v31 = vpop.f32.mrf.mxu2 }
 0x1ce   :  { %v453_v33 = vadd.f32 %v452_v31, %v391_v24 }
 0x1d0   :  { %v462_v36 = vmax.f32 %v453_v33, 0.0 }
 0x1d2   :  { %v466_v40 = vpack.c.bf16 %v462_v36, %v461_v35 }
 0x1d4   :  { %481 = vmatpush.bf16.msrb.mxu3 %v466_v40 }
 0x1d8   :  { %482 = vmatpush.bf16.msrb.mxu3 %v465_v46 }
 0x1dc   :  { %483 = vmatpush.bf16.msrb.mxu3 %v464_v51 }
 0x1e0   :  { %484 = vmatpush.bf16.msrb.mxu3 %v463_v53 }
 0x1e3   :  { %567 = vmatmul.msk.bf16.vlgmr.msrb.gmra.mxu3 %vm413_vm1, %v467_v54 }
 0x266   :  { %v486_v56 = vpop.f32.mrf.mxu3 }
 0x267   :  { %v487_v57 = vadd.f32 %v486_v56, %v472_v55 }
 0x269   :  { %490 = vst [vmem:[#allocation2] sm:$0x3f] %v487_v57 }
 0x26a   :  { %501 = dma.vmem_to_hbm [thread:$0]  %s497_s19, 128, %s499_s1, [#allocation3]  }
 0x26e   :  { %v488_v58 = vpop.f32.mrf.mxu3 }
 0x26f   :  { %617 = dma.done.wait [#allocation3], 128  }
 0x270   :  { %618 = vsyncadd [#allocation3], 4294967168 }
 0x271   :  { %506 = vsyncpa [#allocation3], 1 }

</bundles_post_ra>
